<compile_context>
chip_gen: v7x
topology: tpu7x:2x2x1
jax: 0.10.0
libtpu: 0.0.40
codegen_flags: <defaults>
</compile_context>

<pallas_src>
import math

import jax
import jax.numpy as jnp
from jax.experimental import pallas as pl
from jax.experimental.pallas import tpu as pltpu


_VMEM = pl.BlockSpec(memory_space=pltpu.MemorySpace.VMEM)
_MXU_DTYPE = jnp.bfloat16
_LN_EPS = 1e-5


# ----------------------------- small helpers -----------------------------

def _round_up(v, m):
    return ((v + m - 1) // m) * m


def _pad_to(arr, shape):
    pads = []
    for d, s in zip(arr.shape, shape):
        assert s >= d, (arr.shape, shape)
        pads.append((0, s - d))
    if all(p == (0, 0) for p in pads):
        return arr
    return jnp.pad(arr, pads)


def _vmem_capacity_bytes():
    """Physical VMEM per TensorCore (v5e/v6e: 128 MiB, v7x: 64 MiB)."""
    try:
        cap = getattr(pltpu.get_tpu_info(), "vmem_capacity_bytes", None)
        if cap:
            return int(cap)
    except Exception:
        pass
    return 128 * 1024 * 1024


def _vmem_limit_bytes():
    # Explicit scoped-VMEM limit: generous, but always below physical capacity.
    return int(min(64 * 1024 * 1024, _vmem_capacity_bytes() * 3 // 4))


def _default_row_tile():
    # v7x (64 MiB VMEM, ~3.2 TB/s HBM): per-grid-step overhead binds sooner, so
    # use bigger row tiles; a 1024x512 bf16 A tile (1 MiB, double-buffered) is
    # still tiny against the 64 MiB budget.
    return 1024 if _vmem_capacity_bytes() <= 64 * 1024 * 1024 else 512


def _tiles_for(n, tm, tk):
    n128 = _round_up(n, 128)
    tm = min(tm, n128)
    tk = min(tk, n128)
    if max(tm, tk) % min(tm, tk) != 0:
        tm = tk = max(tm, tk)
    np_ = _round_up(n128, max(tm, tk))
    return tm, tk, np_


def _ln_relu(h, gamma, beta, inv_h):
    """LayerNorm(eps=1e-5, biased var) + ReLU.

    Valid with zero-padded feature columns: padded lanes of `h` are exactly 0,
    so sums only see the real features; the scale uses 1/hidden_real and the
    zero-padded gamma/beta force padded lanes back to 0 after the affine.
    """
    mean = jnp.sum(h, axis=-1, keepdims=True) * inv_h
    var = jnp.sum(h * h, axis=-1, keepdims=True) * inv_h - mean * mean
    y = (h - mean) * jax.lax.rsqrt(var + _LN_EPS)
    return jnp.maximum(y * gamma + beta, 0.0)


# ----------------------------- fused whole-forward kernel (small graphs) -----------------------------

def _make_fused_kernel(n_layer, inv_hidden):
    """Whole GCN_Graph forward in one kernel; everything VMEM/vreg resident."""
    L = n_layer

    def kernel(*refs):
        a_ref, x_ref = refs[0], refs[1]
        conv_w = refs[2:2 + L]              # bf16 weights
        small_ref = refs[2 + L]             # packed (3L+2, C) f32 small params
        oh_ref = refs[3 + L]                # (G, N) bf16 one-hot
        invc_ref = refs[4 + L]              # (G, 1) f32
        mw1, mw2 = refs[5 + L], refs[6 + L]
        o_ref = refs[7 + L]                 # (G, C) f32

        a = a_ref[...]                      # bf16 adjacency, resident across layers
        mxu = a.dtype
        small = small_ref[...]

        def row(i):                         # (1, C) slice of the packed params
            return small[i:i + 1, :]

        def conv(h, w_ref, bias):
            xw = jnp.dot(h.astype(mxu), w_ref[...], preferred_element_type=jnp.float32)
            return jnp.dot(a, xw.astype(mxu), preferred_element_type=jnp.float32) + bias

        h = conv(x_ref[...], conv_w[0], row(0))
        for i in range(L - 1):
            h = _ln_relu(h, row(L + i), row(2 * L - 1 + i), inv_hidden)
            # F.dropout(training=False) == identity
            h = conv(h, conv_w[i + 1], row(i + 1))

        # global mean pool: (1/count) * onehot @ h
        pooled = jnp.dot(oh_ref[...], h.astype(mxu),
                         preferred_element_type=jnp.float32) * invc_ref[...]

        # MLP head: Linear -> LayerNorm -> ReLU -> Linear
        base = 3 * L - 2
        z = jnp.dot(pooled.astype(mxu), mw1[...],
                    preferred_element_type=jnp.float32) + row(base)
        z = _ln_relu(z, row(base + 1), row(base + 2), inv_hidden)
        o_ref[...] = jnp.dot(z.astype(mxu), mw2[...],
                             preferred_element_type=jnp.float32) + row(base + 3)

    return kernel


# ----------------------------- tiled GCNConv (large graphs) -----------------------------

def _xw_kernel(x_ref, w_ref, o_ref):
    o_ref[...] = jnp.dot(x_ref[...], w_ref[...],
                         preferred_element_type=jnp.float32).astype(o_ref.dtype)


def _make_a_xw_kernel(*, tk, resident_xw, fuse_ln_relu, inv_h):
    def kernel(a_ref, xw_ref, p_ref, o_ref, *scratch):
        k = pl.program_id(1)
        nk = pl.num_programs(1)
        p = p_ref[...]                                    # rows: bias, gamma, beta

        if resident_xw:
            xw = xw_ref[pl.ds(pl.multiple_of(k * tk, tk), tk), :]
        else:
            xw = xw_ref[...]
        part = jnp.dot(a_ref[...], xw, preferred_element_type=jnp.float32)

        if fuse_ln_relu:
            acc_ref, = scratch

            @pl.when(k == 0)
            def _init():
                acc_ref[...] = jnp.broadcast_to(p[0:1, :], acc_ref.shape)

            acc_ref[...] += part

            @pl.when(k == nk - 1)
            def _finish():
                # Fused LayerNorm+ReLU epilogue, bf16 writeback (halves HBM bytes).
                o_ref[...] = _ln_relu(acc_ref[...], p[1:2, :], p[2:3, :],
                                      inv_h).astype(o_ref.dtype)
        else:
            # Accumulate straight into the resident f32 output block: no scratch
            # accumulator, no final copy; bias folded into the k==0 init.
            @pl.when(k == 0)
            def _init():
                o_ref[...] = jnp.broadcast_to(p[0:1, :], o_ref.shape)

            o_ref[...] += part

    return kernel


def gcn_conv_tiled(a_norm, x, w, b, *, gamma=None, beta=None, fuse_ln_relu=False,
                   ln_dim=None, tm=None, tk=None, trim=True,
                   xw_resident_bytes=16 * 1024 * 1024):
    """One GCNConv (A_norm @ (X @ W) + b) for large graphs, HBM-roofline oriented."""
    if tm is None:
        tm = _default_row_tile()
    if tk is None:
        tk = 512
    n, n2 = a_norm.shape
    assert n == n2 and x.shape[0] == n
    fin = x.shape[1]
    h_real = w.shape[1]
    # x may carry zero-padded feature columns from a previous padded layer.
    assert fin >= w.shape[0]
    hp = _round_up(h_real, 128)
    fp = _round_up(fin, 128)
    inv_h = 1.0 / float(h_real if ln_dim is None else ln_dim)

    tm, tk, np_ = _tiles_for(n, tm, tk)
    bf = _MXU_DTYPE
    vmem_limit = _vmem_limit_bytes()

    a_p = _pad_to(a_norm, (np_, np_)).astype(bf)
    x_p = _pad_to(x, (np_, fp)).astype(bf)
    w_p = _pad_to(w, (fp, hp)).astype(bf)
    zeros_row = jnp.zeros((1, hp), jnp.float32)
    p = jnp.concatenate(
        [_pad_to(b.astype(jnp.float32), (1, hp)),
         _pad_to(gamma.astype(jnp.float32), (1, hp)) if gamma is not None else zeros_row,
         _pad_to(beta.astype(jnp.float32), (1, hp)) if beta is not None else zeros_row],
        axis=0)

    # Stage 1: XW = X @ W (row-tiled; bf16 output halves the HBM traffic it costs).
    xw = pl.pallas_call(
        _xw_kernel,
        out_shape=jax.ShapeDtypeStruct((np_, hp), bf),
        grid=(np_ // tm,),
        in_specs=[pl.BlockSpec((tm, fp), lambda i: (i, 0)),
                  pl.BlockSpec((fp, hp), lambda i: (0, 0))],
        out_specs=pl.BlockSpec((tm, hp), lambda i: (i, 0)),
        compiler_params=pltpu.CompilerParams(
            dimension_semantics=("parallel",),
            vmem_limit_bytes=vmem_limit),
    )(x_p, w_p)

    # Stage 2: A_norm @ XW (+ bias) [+ fused LayerNorm+ReLU epilogue].
    resident_xw = np_ * hp * 2 <= xw_resident_bytes
    xw_spec = (pl.BlockSpec((np_, hp), lambda i, k: (0, 0)) if resident_xw
               else pl.BlockSpec((tk, hp), lambda i, k: (k, 0)))
    out_dtype = bf if fuse_ln_relu else jnp.float32
    scratch = [pltpu.VMEM((tm, hp), jnp.float32)] if fuse_ln_relu else []

    # TODO(synk): for sparse real graphs, scalar-prefetch a per-(i,k) nonzero-block
    # table (PrefetchScalarGridSpec) and skip all-zero A tiles instead of dense A@XW.
    out = pl.pallas_call(
        _make_a_xw_kernel(tk=tk, resident_xw=resident_xw,
                          fuse_ln_relu=fuse_ln_relu, inv_h=inv_h),
        out_shape=jax.ShapeDtypeStruct((np_, hp), out_dtype),
        grid=(np_ // tm, np_ // tk),
        in_specs=[pl.BlockSpec((tm, tk), lambda i, k: (i, k)),
                  xw_spec,
                  pl.BlockSpec((3, hp), lambda i, k: (0, 0))],
        out_specs=pl.BlockSpec((tm, hp), lambda i, k: (i, 0)),
        scratch_shapes=scratch,
        compiler_params=pltpu.CompilerParams(
            dimension_semantics=("parallel", "arbitrary"),
            vmem_limit_bytes=vmem_limit),
    )(a_p, xw, p)

    if trim:
        out = out[:n, :h_real]
    return out


# ----------------------------- tiled mean pool + MLP head -----------------------------

def _pool_kernel(oh_ref, h_ref, invc_ref, o_ref):
    k = pl.program_id(0)

    @pl.when(k == 0)
    def _init():
        o_ref[...] = jnp.zeros_like(o_ref)

    o_ref[...] += jnp.dot(oh_ref[...], h_ref[...], preferred_element_type=jnp.float32)

    @pl.when(k == pl.num_programs(0) - 1)
    def _finish():
        o_ref[...] *= invc_ref[...]


def mean_pool_tiled(onehot, h, inv_counts, *, tk=512):
    g, n = onehot.shape
    assert h.shape[0] == n
    hp = h.shape[1]
    tk = min(tk, _round_up(n, 128))
    np_ = _round_up(n, tk)
    oh_p = _pad_to(onehot, (g, np_)).astype(_MXU_DTYPE)
    h_p = _pad_to(h, (np_, hp)).astype(_MXU_DTYPE)
    return pl.pallas_call(
        _pool_kernel,
        out_shape=jax.ShapeDtypeStruct((g, hp), jnp.float32),
        grid=(np_ // tk,),
        in_specs=[pl.BlockSpec((g, tk), lambda k: (0, k)),
                  pl.BlockSpec((tk, hp), lambda k: (k, 0)),
                  pl.BlockSpec((g, 1), lambda k: (0, 0))],
        out_specs=pl.BlockSpec((g, hp), lambda k: (0, 0)),
        compiler_params=pltpu.CompilerParams(
            dimension_semantics=("arbitrary",)),
    )(oh_p, h_p, inv_counts)


def _make_mlp_head_kernel(inv_h):
    def kernel(z_ref, w1_ref, w2_ref, p_ref, b2_ref, o_ref):
        bf = w1_ref.dtype
        p = p_ref[...]
        z = jnp.dot(z_ref[...].astype(bf), w1_ref[...],
                    preferred_element_type=jnp.float32) + p[0:1, :]
        z = _ln_relu(z, p[1:2, :], p[2:3, :], inv_h)
        o_ref[...] = jnp.dot(z.astype(bf), w2_ref[...],
                             preferred_element_type=jnp.float32) + b2_ref[...]
    return kernel


def _mlp_head(pooled, params, hidden):
    g, hp = pooled.shape
    out_dim = params["mlp_w2"].shape[1]
    op = _round_up(out_dim, 128)          # lane-dense output store
    bf = _MXU_DTYPE
    w1 = _pad_to(params["mlp_w1"], (hp, hp)).astype(bf)
    w2 = _pad_to(params["mlp_w2"], (hp, op)).astype(bf)
    p = jnp.concatenate([_pad_to(params["mlp_b1"], (1, hp)),
                         _pad_to(params["mlp_norm_g"], (1, hp)),
                         _pad_to(params["mlp_norm_b"], (1, hp))], axis=0)
    b2 = _pad_to(params["mlp_b2"], (1, op))
    out = pl.pallas_call(
        _make_mlp_head_kernel(1.0 / float(hidden)),
        out_shape=jax.ShapeDtypeStruct((g, op), jnp.float32),
        in_specs=[_VMEM] * 5,
        out_specs=_VMEM,
    )(pooled, w1, w2, p, b2)
    return out[:, :out_dim]


# ----------------------------- forward paths + dispatch -----------------------------

def gcn_graph_forward_tiled(params, x, a_norm, batch_onehot, inv_counts, n_layer,
                            *, tm=None, tk=None):
    if tm is None:
        tm = _default_row_tile()
    if tk is None:
        tk = 512
    n = a_norm.shape[0]
    hidden = params["mlp_w1"].shape[0]
    tm, tk, np_ = _tiles_for(n, tm, tk)

    # Pad + cast the adjacency once; every layer reuses the aligned bf16 copy.
    a_p = _pad_to(a_norm, (np_, np_)).astype(_MXU_DTYPE)
    h = _pad_to(x, (np_, x.shape[1]))
    for i in range(n_layer):
        last = i == n_layer - 1
        h = gcn_conv_tiled(
            a_p, h, params["conv_w"][i], params["conv_b"][i],
            gamma=None if last else params["norm_g"][i],
            beta=None if last else params["norm_b"][i],
            fuse_ln_relu=not last, ln_dim=hidden,
            tm=tm, tk=tk, trim=False)
    oh = _pad_to(batch_onehot, (batch_onehot.shape[0], np_))
    pooled = mean_pool_tiled(oh, h, inv_counts, tk=tk)
    return _mlp_head(pooled, params, hidden)


def gcn_graph_forward(params, x, a_norm, batch_onehot, inv_counts, n_layer,
                      *, force_tiled=False):
    """Capacity-gated dispatch: fully fused single pallas_call when the graph
    fits comfortably in VMEM, otherwise the tiled multi-kernel path."""
    n = x.shape[0]
    g = batch_onehot.shape[0]
    hidden = params["mlp_w1"].shape[0]
    out_dim = params["mlp_w2"].shape[1]
    fin_pad = _round_up(x.shape[1], 128)
    cpad = _round_up(max(hidden, out_dim), 128)
    L = n_layer

    # Rough resident-bytes estimate for the fused kernel (bf16 operands plus a
    # few live f32 activations); gate at ~40% of physical VMEM.
    resident = 2 * (n * n + n * fin_pad + g * n
                    + fin_pad * cpad + (L + 1) * cpad * cpad)
    resident += 4 * 4 * n * cpad
    if force_tiled or resident > _vmem_capacity_bytes() * 2 // 5:
        return gcn_graph_forward_tiled(params, x, a_norm, batch_onehot,
                                       inv_counts, n_layer)

    bf = _MXU_DTYPE
    args = [a_norm.astype(bf), _pad_to(x, (n, fin_pad)).astype(bf)]
    args.append(_pad_to(params["conv_w"][0], (fin_pad, cpad)).astype(bf))
    for i in range(1, L):
        args.append(_pad_to(params["conv_w"][i], (cpad, cpad)).astype(bf))
    rows = ([_pad_to(r, (1, cpad)) for r in params["conv_b"]]
            + [_pad_to(r, (1, cpad)) for r in params["norm_g"]]
            + [_pad_to(r, (1, cpad)) for r in params["norm_b"]]
            + [_pad_to(params["mlp_b1"], (1, cpad)),
               _pad_to(params["mlp_norm_g"], (1, cpad)),
               _pad_to(params["mlp_norm_b"], (1, cpad)),
               _pad_to(params["mlp_b2"], (1, cpad))])
    args.append(jnp.concatenate(rows, axis=0))      # single packed small-param ref
    args.append(batch_onehot.astype(bf))
    args.append(inv_counts)
    args.append(_pad_to(params["mlp_w1"], (cpad, cpad)).astype(bf))
    args.append(_pad_to(params["mlp_w2"], (cpad, cpad)).astype(bf))

    # TODO(synk): the fused kernel is grid-less (one TensorCore). A megacore split
    # needs per-graph partitioning of the block-diagonal adjacency; large batches
    # should take the tiled path above instead.
    out = pl.pallas_call(
        _make_fused_kernel(L, 1.0 / float(hidden)),
        out_shape=jax.ShapeDtypeStruct((g, cpad), jnp.float32),
        in_specs=[_VMEM] * len(args),
        out_specs=_VMEM,
        compiler_params=pltpu.CompilerParams(
            vmem_limit_bytes=_vmem_limit_bytes()),
    )(*args)
    return out[:, :out_dim]


# ----------------------------- pure-JAX f32 reference -----------------------------

def gcn_graph_reference(params, x, a_norm, batch_onehot, inv_counts, n_layer):
    def ln(h, g, b):
        mean = jnp.mean(h, axis=-1, keepdims=True)
        var = jnp.mean((h - mean) ** 2, axis=-1, keepdims=True)
        return (h - mean) * jax.lax.rsqrt(var + _LN_EPS) * g + b

    h = a_norm @ (x @ params["conv_w"][0]) + params["conv_b"][0]
    for i in range(n_layer - 1):
        h = jnp.maximum(ln(h, params["norm_g"][i], params["norm_b"][i]), 0.0)
        h = a_norm @ (h @ params["conv_w"][i + 1]) + params["conv_b"][i + 1]
    pooled = (batch_onehot @ h) * inv_counts
    z = pooled @ params["mlp_w1"] + params["mlp_b1"]
    z = jnp.maximum(ln(z, params["mlp_norm_g"], params["mlp_norm_b"]), 0.0)
    return z @ params["mlp_w2"] + params["mlp_b2"]


# ----------------------------- parameter init (deterministic) -----------------------------

def glorot(key, fan_in, fan_out):
    lim = jnp.sqrt(6.0 / (fan_in + fan_out))
    return jax.random.uniform(key, (fan_in, fan_out), jnp.float32, -lim, lim)


def init_params(key, input_dim, hidden_dim, output_dim, n_layer):
    keys = jax.random.split(key, n_layer + 2)
    in_dims = [input_dim] + [hidden_dim] * (n_layer - 1)
    out_dims = [hidden_dim] * n_layer  # GCN inside GCN_Graph outputs hidden_dim
    return {
        "conv_w": [glorot(keys[i], in_dims[i], out_dims[i]) for i in range(n_layer)],
        "conv_b": [jnp.zeros((1, out_dims[i]), jnp.float32) for i in range(n_layer)],
        "norm_g": [jnp.ones((1, hidden_dim), jnp.float32) for _ in range(n_layer - 1)],
        "norm_b": [jnp.zeros((1, hidden_dim), jnp.float32) for _ in range(n_layer - 1)],
        "mlp_w1": glorot(keys[n_layer], hidden_dim, hidden_dim),
        "mlp_b1": jnp.zeros((1, hidden_dim), jnp.float32),
        "mlp_norm_g": jnp.ones((1, hidden_dim), jnp.float32),
        "mlp_norm_b": jnp.zeros((1, hidden_dim), jnp.float32),
        "mlp_w2": glorot(keys[n_layer + 1], hidden_dim, output_dim),
        "mlp_b2": jnp.zeros((1, output_dim), jnp.float32),
    }


# ----------------------------- graph preprocessing (glue) -----------------------------

def build_norm_adj(edge_index, num_nodes):
    # dense \hat{A}_norm = D^{-1/2} (A + I) D^{-1/2}, A[dst, src] = 1
    src, dst = edge_index[0], edge_index[1]
    adj = jnp.zeros((num_nodes, num_nodes), jnp.float32).at[dst, src].set(1.0)
    adj = adj + jnp.eye(num_nodes, dtype=jnp.float32)
    deg = jnp.sum(adj, axis=1)
    dinv = jax.lax.rsqrt(jnp.maximum(deg, 1.0))
    return dinv[:, None] * adj * dinv[None, :]


def build_batch_onehot(batch, num_graphs):
    onehot = (batch[None, :] == jnp.arange(num_graphs)[:, None]).astype(jnp.float32)
    counts = jnp.maximum(jnp.sum(onehot, axis=1, keepdims=True), 1.0)
    return onehot, 1.0 / counts


# ----------------------------- main -----------------------------

if __name__ == "__main__":
    key = jax.random.PRNGKey(0)
    k_x, k_p, k_x2, k_e2, k_p2 = jax.random.split(key, 5)

    # ---- small graph: fused single-call path ----
    INPUT_DIM, HIDDEN_DIM, OUTPUT_DIM = 8, 32, 8
    N_LAYER, N_NODES, N_GRAPHS = 3, 16, 2

    x = jax.random.normal(k_x, (N_NODES, INPUT_DIM), jnp.float32)
    src0 = jnp.arange(8)
    ring_src = jnp.concatenate([src0, 8 + src0])
    ring_dst = jnp.concatenate([(src0 + 1) % 8, 8 + (src0 + 1) % 8])
    edge_index = jnp.stack([jnp.concatenate([ring_src, ring_dst]),
                            jnp.concatenate([ring_dst, ring_src])]).astype(jnp.int32)
    batch = jnp.concatenate([jnp.zeros(8, jnp.int32), jnp.ones(8, jnp.int32)])

    params = init_params(k_p, INPUT_DIM, HIDDEN_DIM, OUTPUT_DIM, N_LAYER)
    a_norm = build_norm_adj(edge_index, N_NODES)
    oh, invc = build_batch_onehot(batch, N_GRAPHS)

    out = jax.block_until_ready(
        gcn_graph_forward(params, x, a_norm, oh, invc, N_LAYER))
    ref = gcn_graph_reference(params, x, a_norm, oh, invc, N_LAYER)
    assert out.shape == (N_GRAPHS, OUTPUT_DIM)
    assert bool(jnp.all(jnp.isfinite(out)))
    err = float(jnp.linalg.norm(out - ref) / jnp.maximum(jnp.linalg.norm(ref), 1e-6))
    assert err < 0.1, f"fused path mismatch: rel L2 err {err}"

    # ---- larger graph: tiled (padded, resident-XW, fused-LN-epilogue) path ----
    IN2, HID2, OUT2, L2 = 64, 128, 16, 3
    N2, G2 = 640, 4                         # 640 exercises padding to the 512 tile grid
    x2 = jax.random.normal(k_x2, (N2, IN2), jnp.float32)
    src2 = jax.random.randint(k_e2, (4 * N2,), 0, N2)
    dst2 = jnp.roll(src2, 1)
    edge_index2 = jnp.stack([jnp.concatenate([src2, dst2]),
                             jnp.concatenate([dst2, src2])]).astype(jnp.int32)
    batch2 = jnp.repeat(jnp.arange(G2, dtype=jnp.int32), N2 // G2)

    params2 = init_params(k_p2, IN2, HID2, OUT2, L2)
    a2 = build_norm_adj(edge_index2, N2)
    oh2, invc2 = build_batch_onehot(batch2, G2)

    out2 = jax.block_until_ready(
        gcn_graph_forward(params2, x2, a2, oh2, invc2, L2, force_tiled=True))
    ref2 = gcn_graph_reference(params2, x2, a2, oh2, invc2, L2)
    assert out2.shape == (G2, OUT2)
    assert bool(jnp.all(jnp.isfinite(out2)))
    err2 = float(jnp.linalg.norm(out2 - ref2) / jnp.maximum(jnp.linalg.norm(ref2), 1e-6))
    assert err2 < 0.1, f"tiled path mismatch: rel L2 err {err2}"

    print("KERNEL_OK")
</pallas_src>

<mosaic_0001>
module attributes {stable_mosaic.version = 11 : i64} {
  func.func @kernel(%arg0: memref<16x16xbf16, #tpu.memory_space<vmem>>, %arg1: memref<16x128xbf16, #tpu.memory_space<vmem>>, %arg2: memref<128x128xbf16, #tpu.memory_space<vmem>>, %arg3: memref<128x128xbf16, #tpu.memory_space<vmem>>, %arg4: memref<128x128xbf16, #tpu.memory_space<vmem>>, %arg5: memref<11x128xf32, #tpu.memory_space<vmem>>, %arg6: memref<2x16xbf16, #tpu.memory_space<vmem>>, %arg7: memref<2x1xf32, #tpu.memory_space<vmem>>, %arg8: memref<128x128xbf16, #tpu.memory_space<vmem>>, %arg9: memref<128x128xbf16, #tpu.memory_space<vmem>>, %arg10: memref<2x128xf32, #tpu.memory_space<vmem>>) attributes {dimension_semantics = [], scalar_prefetch = 0 : i64, scratch_operands = 0 : i64, tpu.core_type = #tpu.core_type<tc>} {
    %c0 = arith.constant 0 : index
    %c0_0 = arith.constant 0 : index
    %0 = vector.load %arg0[%c0, %c0_0] : memref<16x16xbf16, #tpu.memory_space<vmem>>, vector<16x16xbf16>
    %c0_1 = arith.constant 0 : index
    %c0_2 = arith.constant 0 : index
    %1 = vector.load %arg5[%c0_1, %c0_2] : memref<11x128xf32, #tpu.memory_space<vmem>>, vector<11x128xf32>
    %c0_3 = arith.constant 0 : index
    %c0_4 = arith.constant 0 : index
    %2 = vector.load %arg1[%c0_3, %c0_4] : memref<16x128xbf16, #tpu.memory_space<vmem>>, vector<16x128xbf16>
    %3 = vector.extract_strided_slice %1 {offsets = [0, 0], sizes = [1, 128], strides = [1, 1]} : vector<11x128xf32> to vector<1x128xf32>
    %c0_5 = arith.constant 0 : index
    %c0_6 = arith.constant 0 : index
    %4 = vector.load %arg2[%c0_5, %c0_6] : memref<128x128xbf16, #tpu.memory_space<vmem>>, vector<128x128xbf16>
    %cst = arith.constant dense<0.000000e+00> : vector<16x128xf32>
    %5 = tpu.matmul %2, %4, %cst {dimension_numbers = #tpu.dot_dimension_numbers<[1], [0], [0], [1], [0, 0, 1, 1], [], []>} : vector<16x128xbf16>, vector<128x128xbf16>, vector<16x128xf32> -> vector<16x128xf32>
    %6 = arith.truncf %5 : vector<16x128xf32> to vector<16x128xbf16>
    %cst_7 = arith.constant dense<0.000000e+00> : vector<16x128xf32>
    %7 = tpu.matmul %0, %6, %cst_7 {dimension_numbers = #tpu.dot_dimension_numbers<[1], [0], [0], [1], [0, 0, 1, 1], [], []>} : vector<16x16xbf16>, vector<16x128xbf16>, vector<16x128xf32> -> vector<16x128xf32>
    %8 = vector.broadcast %3 : vector<1x128xf32> to vector<16x128xf32>
    %9 = arith.addf %7, %8 : vector<16x128xf32>
    %10 = vector.extract_strided_slice %1 {offsets = [3, 0], sizes = [1, 128], strides = [1, 1]} : vector<11x128xf32> to vector<1x128xf32>
    %11 = vector.extract_strided_slice %1 {offsets = [5, 0], sizes = [1, 128], strides = [1, 1]} : vector<11x128xf32> to vector<1x128xf32>
    %cst_8 = arith.constant dense<0.000000e+00> : vector<16xf32>
    %12 = vector.multi_reduction <add>, %9, %cst_8 [1] : vector<16x128xf32> to vector<16xf32>
    %13 = vector.shape_cast %12 : vector<16xf32> to vector<16x1xf32>
    %cst_9 = arith.constant 3.125000e-02 : f32
    %14 = vector.broadcast %cst_9 : f32 to vector<16x1xf32>
    %15 = arith.mulf %13, %14 : vector<16x1xf32>
    %16 = arith.mulf %9, %9 : vector<16x128xf32>
    %cst_10 = arith.constant dense<0.000000e+00> : vector<16xf32>
    %17 = vector.multi_reduction <add>, %16, %cst_10 [1] : vector<16x128xf32> to vector<16xf32>
    %18 = vector.shape_cast %17 : vector<16xf32> to vector<16x1xf32>
    %cst_11 = arith.constant 3.125000e-02 : f32
    %19 = vector.broadcast %cst_11 : f32 to vector<16x1xf32>
    %20 = arith.mulf %18, %19 : vector<16x1xf32>
    %21 = arith.mulf %15, %15 : vector<16x1xf32>
    %22 = arith.subf %20, %21 : vector<16x1xf32>
    %23 = vector.broadcast %15 : vector<16x1xf32> to vector<16x128xf32>
    %24 = arith.subf %9, %23 : vector<16x128xf32>
    %cst_12 = arith.constant 9.99999974E-6 : f32
    %25 = vector.broadcast %cst_12 : f32 to vector<16x1xf32>
    %26 = arith.addf %22, %25 : vector<16x1xf32>
    %27 = math.rsqrt %26 : vector<16x1xf32>
    %28 = vector.broadcast %27 : vector<16x1xf32> to vector<16x128xf32>
    %29 = arith.mulf %24, %28 : vector<16x128xf32>
    %30 = vector.broadcast %10 : vector<1x128xf32> to vector<16x128xf32>
    %31 = arith.mulf %29, %30 : vector<16x128xf32>
    %32 = vector.broadcast %11 : vector<1x128xf32> to vector<16x128xf32>
    %33 = arith.addf %31, %32 : vector<16x128xf32>
    %cst_13 = arith.constant 0.000000e+00 : f32
    %34 = vector.broadcast %cst_13 : f32 to vector<16x128xf32>
    %35 = arith.maximumf %33, %34 : vector<16x128xf32>
    %36 = vector.extract_strided_slice %1 {offsets = [1, 0], sizes = [1, 128], strides = [1, 1]} : vector<11x128xf32> to vector<1x128xf32>
    %37 = arith.truncf %35 : vector<16x128xf32> to vector<16x128xbf16>
    %c0_14 = arith.constant 0 : index
    %c0_15 = arith.constant 0 : index
    %38 = vector.load %arg3[%c0_14, %c0_15] : memref<128x128xbf16, #tpu.memory_space<vmem>>, vector<128x128xbf16>
    %cst_16 = arith.constant dense<0.000000e+00> : vector<16x128xf32>
    %39 = tpu.matmul %37, %38, %cst_16 {dimension_numbers = #tpu.dot_dimension_numbers<[1], [0], [0], [1], [0, 0, 1, 1], [], []>} : vector<16x128xbf16>, vector<128x128xbf16>, vector<16x128xf32> -> vector<16x128xf32>
    %40 = arith.truncf %39 : vector<16x128xf32> to vector<16x128xbf16>
    %cst_17 = arith.constant dense<0.000000e+00> : vector<16x128xf32>
    %41 = tpu.matmul %0, %40, %cst_17 {dimension_numbers = #tpu.dot_dimension_numbers<[1], [0], [0], [1], [0, 0, 1, 1], [], []>} : vector<16x16xbf16>, vector<16x128xbf16>, vector<16x128xf32> -> vector<16x128xf32>
    %42 = vector.broadcast %36 : vector<1x128xf32> to vector<16x128xf32>
    %43 = arith.addf %41, %42 : vector<16x128xf32>
    %44 = vector.extract_strided_slice %1 {offsets = [4, 0], sizes = [1, 128], strides = [1, 1]} : vector<11x128xf32> to vector<1x128xf32>
    %45 = vector.extract_strided_slice %1 {offsets = [6, 0], sizes = [1, 128], strides = [1, 1]} : vector<11x128xf32> to vector<1x128xf32>
    %cst_18 = arith.constant dense<0.000000e+00> : vector<16xf32>
    %46 = vector.multi_reduction <add>, %43, %cst_18 [1] : vector<16x128xf32> to vector<16xf32>
    %47 = vector.shape_cast %46 : vector<16xf32> to vector<16x1xf32>
    %cst_19 = arith.constant 3.125000e-02 : f32
    %48 = vector.broadcast %cst_19 : f32 to vector<16x1xf32>
    %49 = arith.mulf %47, %48 : vector<16x1xf32>
    %50 = arith.mulf %43, %43 : vector<16x128xf32>
    %cst_20 = arith.constant dense<0.000000e+00> : vector<16xf32>
    %51 = vector.multi_reduction <add>, %50, %cst_20 [1] : vector<16x128xf32> to vector<16xf32>
    %52 = vector.shape_cast %51 : vector<16xf32> to vector<16x1xf32>
    %cst_21 = arith.constant 3.125000e-02 : f32
    %53 = vector.broadcast %cst_21 : f32 to vector<16x1xf32>
    %54 = arith.mulf %52, %53 : vector<16x1xf32>
    %55 = arith.mulf %49, %49 : vector<16x1xf32>
    %56 = arith.subf %54, %55 : vector<16x1xf32>
    %57 = vector.broadcast %49 : vector<16x1xf32> to vector<16x128xf32>
    %58 = arith.subf %43, %57 : vector<16x128xf32>
    %cst_22 = arith.constant 9.99999974E-6 : f32
    %59 = vector.broadcast %cst_22 : f32 to vector<16x1xf32>
    %60 = arith.addf %56, %59 : vector<16x1xf32>
    %61 = math.rsqrt %60 : vector<16x1xf32>
    %62 = vector.broadcast %61 : vector<16x1xf32> to vector<16x128xf32>
    %63 = arith.mulf %58, %62 : vector<16x128xf32>
    %64 = vector.broadcast %44 : vector<1x128xf32> to vector<16x128xf32>
    %65 = arith.mulf %63, %64 : vector<16x128xf32>
    %66 = vector.broadcast %45 : vector<1x128xf32> to vector<16x128xf32>
    %67 = arith.addf %65, %66 : vector<16x128xf32>
    %cst_23 = arith.constant 0.000000e+00 : f32
    %68 = vector.broadcast %cst_23 : f32 to vector<16x128xf32>
    %69 = arith.maximumf %67, %68 : vector<16x128xf32>
    %70 = vector.extract_strided_slice %1 {offsets = [2, 0], sizes = [1, 128], strides = [1, 1]} : vector<11x128xf32> to vector<1x128xf32>
    %71 = arith.truncf %69 : vector<16x128xf32> to vector<16x128xbf16>
    %c0_24 = arith.constant 0 : index
    %c0_25 = arith.constant 0 : index
    %72 = vector.load %arg4[%c0_24, %c0_25] : memref<128x128xbf16, #tpu.memory_space<vmem>>, vector<128x128xbf16>
    %cst_26 = arith.constant dense<0.000000e+00> : vector<16x128xf32>
    %73 = tpu.matmul %71, %72, %cst_26 {dimension_numbers = #tpu.dot_dimension_numbers<[1], [0], [0], [1], [0, 0, 1, 1], [], []>} : vector<16x128xbf16>, vector<128x128xbf16>, vector<16x128xf32> -> vector<16x128xf32>
    %74 = arith.truncf %73 : vector<16x128xf32> to vector<16x128xbf16>
    %cst_27 = arith.constant dense<0.000000e+00> : vector<16x128xf32>
    %75 = tpu.matmul %0, %74, %cst_27 {dimension_numbers = #tpu.dot_dimension_numbers<[1], [0], [0], [1], [0, 0, 1, 1], [], []>} : vector<16x16xbf16>, vector<16x128xbf16>, vector<16x128xf32> -> vector<16x128xf32>
    %76 = vector.broadcast %70 : vector<1x128xf32> to vector<16x128xf32>
    %77 = arith.addf %75, %76 : vector<16x128xf32>
    %c0_28 = arith.constant 0 : index
    %c0_29 = arith.constant 0 : index
    %78 = vector.load %arg6[%c0_28, %c0_29] : memref<2x16xbf16, #tpu.memory_space<vmem>>, vector<2x16xbf16>
    %79 = arith.truncf %77 : vector<16x128xf32> to vector<16x128xbf16>
    %cst_30 = arith.constant dense<0.000000e+00> : vector<2x128xf32>
    %80 = tpu.matmul %78, %79, %cst_30 {dimension_numbers = #tpu.dot_dimension_numbers<[1], [0], [0], [1], [0, 0, 1, 1], [], []>} : vector<2x16xbf16>, vector<16x128xbf16>, vector<2x128xf32> -> vector<2x128xf32>
    %c0_31 = arith.constant 0 : index
    %c0_32 = arith.constant 0 : index
    %81 = vector.load %arg7[%c0_31, %c0_32] : memref<2x1xf32, #tpu.memory_space<vmem>>, vector<2x1xf32>
    %82 = vector.broadcast %81 : vector<2x1xf32> to vector<2x128xf32>
    %83 = arith.mulf %80, %82 : vector<2x128xf32>
    %84 = arith.truncf %83 : vector<2x128xf32> to vector<2x128xbf16>
    %c0_33 = arith.constant 0 : index
    %c0_34 = arith.constant 0 : index
    %85 = vector.load %arg8[%c0_33, %c0_34] : memref<128x128xbf16, #tpu.memory_space<vmem>>, vector<128x128xbf16>
    %cst_35 = arith.constant dense<0.000000e+00> : vector<2x128xf32>
    %86 = tpu.matmul %84, %85, %cst_35 {dimension_numbers = #tpu.dot_dimension_numbers<[1], [0], [0], [1], [0, 0, 1, 1], [], []>} : vector<2x128xbf16>, vector<128x128xbf16>, vector<2x128xf32> -> vector<2x128xf32>
    %87 = vector.extract_strided_slice %1 {offsets = [7, 0], sizes = [1, 128], strides = [1, 1]} : vector<11x128xf32> to vector<1x128xf32>
    %88 = vector.broadcast %87 : vector<1x128xf32> to vector<2x128xf32>
    %89 = arith.addf %86, %88 : vector<2x128xf32>
    %90 = vector.extract_strided_slice %1 {offsets = [8, 0], sizes = [1, 128], strides = [1, 1]} : vector<11x128xf32> to vector<1x128xf32>
    %91 = vector.extract_strided_slice %1 {offsets = [9, 0], sizes = [1, 128], strides = [1, 1]} : vector<11x128xf32> to vector<1x128xf32>
    %cst_36 = arith.constant dense<0.000000e+00> : vector<2xf32>
    %92 = vector.multi_reduction <add>, %89, %cst_36 [1] : vector<2x128xf32> to vector<2xf32>
    %93 = vector.shape_cast %92 : vector<2xf32> to vector<2x1xf32>
    %cst_37 = arith.constant 3.125000e-02 : f32
    %94 = vector.broadcast %cst_37 : f32 to vector<2x1xf32>
    %95 = arith.mulf %93, %94 : vector<2x1xf32>
    %96 = arith.mulf %89, %89 : vector<2x128xf32>
    %cst_38 = arith.constant dense<0.000000e+00> : vector<2xf32>
    %97 = vector.multi_reduction <add>, %96, %cst_38 [1] : vector<2x128xf32> to vector<2xf32>
    %98 = vector.shape_cast %97 : vector<2xf32> to vector<2x1xf32>
    %cst_39 = arith.constant 3.125000e-02 : f32
    %99 = vector.broadcast %cst_39 : f32 to vector<2x1xf32>
    %100 = arith.mulf %98, %99 : vector<2x1xf32>
    %101 = arith.mulf %95, %95 : vector<2x1xf32>
    %102 = arith.subf %100, %101 : vector<2x1xf32>
    %103 = vector.broadcast %95 : vector<2x1xf32> to vector<2x128xf32>
    %104 = arith.subf %89, %103 : vector<2x128xf32>
    %cst_40 = arith.constant 9.99999974E-6 : f32
    %105 = vector.broadcast %cst_40 : f32 to vector<2x1xf32>
    %106 = arith.addf %102, %105 : vector<2x1xf32>
    %107 = math.rsqrt %106 : vector<2x1xf32>
    %108 = vector.broadcast %107 : vector<2x1xf32> to vector<2x128xf32>
    %109 = arith.mulf %104, %108 : vector<2x128xf32>
    %110 = vector.broadcast %90 : vector<1x128xf32> to vector<2x128xf32>
    %111 = arith.mulf %109, %110 : vector<2x128xf32>
    %112 = vector.broadcast %91 : vector<1x128xf32> to vector<2x128xf32>
    %113 = arith.addf %111, %112 : vector<2x128xf32>
    %cst_41 = arith.constant 0.000000e+00 : f32
    %114 = vector.broadcast %cst_41 : f32 to vector<2x128xf32>
    %115 = arith.maximumf %113, %114 : vector<2x128xf32>
    %116 = arith.truncf %115 : vector<2x128xf32> to vector<2x128xbf16>
    %c0_42 = arith.constant 0 : index
    %c0_43 = arith.constant 0 : index
    %117 = vector.load %arg9[%c0_42, %c0_43] : memref<128x128xbf16, #tpu.memory_space<vmem>>, vector<128x128xbf16>
    %cst_44 = arith.constant dense<0.000000e+00> : vector<2x128xf32>
    %118 = tpu.matmul %116, %117, %cst_44 {dimension_numbers = #tpu.dot_dimension_numbers<[1], [0], [0], [1], [0, 0, 1, 1], [], []>} : vector<2x128xbf16>, vector<128x128xbf16>, vector<2x128xf32> -> vector<2x128xf32>
    %119 = vector.extract_strided_slice %1 {offsets = [10, 0], sizes = [1, 128], strides = [1, 1]} : vector<11x128xf32> to vector<1x128xf32>
    %120 = vector.broadcast %119 : vector<1x128xf32> to vector<2x128xf32>
    %121 = arith.addf %118, %120 : vector<2x128xf32>
    %c0_45 = arith.constant 0 : index
    %c0_46 = arith.constant 0 : index
    %122 = vector.load %arg10[%c0_45, %c0_46] : memref<2x128xf32, #tpu.memory_space<vmem>>, vector<2x128xf32>
    tpu.vector_store %arg10[%c0_45, %c0_46], %121 {strides = array<i32>} : memref<2x128xf32, #tpu.memory_space<vmem>>, vector<2x128xf32>,
    return
  }
}

</mosaic_0001>

<bundles_post_ra>
// kernel: tpu_custom_call.1
= control target key start
LH: loop header
LB: loop body
LE: loop exit
PB: predicated region body
PF: predicated region fallthrough
CT: control target
= control target key end

     0   :  { %15 = vsyncpa [#allocation3], 0  ;;  %s1929_s0 = inlined_call_operand.hbm [shape: bf16[16,16], index: 0, kind: input, shape index: {}]   ;;  %s1930_s1 = inlined_call_operand.hbm [shape: bf16[16,128], index: 1, kind: input, shape index: {}]   ;;  %s1931_s2 = inlined_call_operand.hbm [shape: bf16[128,128], index: 2, kind: input, shape index: {}]   ;;  %s1932_s3 = inlined_call_operand.hbm [shape: bf16[128,128], index: 3, kind: input, shape index: {}]   ;;  %s1933_s4 = inlined_call_operand.hbm [shape: bf16[128,128], index: 4, kind: input, shape index: {}]   ;;  %s1934_s5 = inlined_call_operand.hbm [shape: f32[11,128], index: 5, kind: input, shape index: {}]   ;;  %s1935_s6 = inlined_call_operand.hbm [shape: bf16[2,16], index: 6, kind: input, shape index: {}]   ;;  %s1936_s7 = inlined_call_operand.hbm [shape: f32[2,1], index: 7, kind: input, shape index: {}]   ;;  %s1937_s8 = inlined_call_operand.hbm [shape: bf16[128,128], index: 8, kind: input, shape index: {}]   ;;  %s1938_s9 = inlined_call_operand.hbm [shape: bf16[128,128], index: 9, kind: input, shape index: {}]   ;;  %s1939_s10 = inlined_call_operand.hbm [shape: f32[2,128], index: 10, kind: output, shape index: {}]  }
   0x1   :  { %16 = vsyncpa [#allocation6], 0 }
   0x2   :  { %17 = vsyncpa [#allocation9], 0 }
   0x3   :  { %18 = vsyncpa [#allocation12], 0 }
   0x4   :  { %19 = vsyncpa [#allocation15], 0 }
   0x5   :  { %20 = vsyncpa [#allocation18], 0 }
   0x6   :  { %21 = vsyncpa [#allocation4], 0  ;;  %s1593_s13 = smov [#allocation5]   ;;  %s1594_s15 = smov [#allocation8]  }
   0x7   :  { %s39_s14 = sshll.u32 %s1593_s13, 4  ;;  %s63_s16 = sshll.u32 %s1594_s15, 4  ;;  %s40_s14 = int_to_ptr.vmem [resolvable:$true] %s39_s14  ;;  %s1666_s16 = int_to_ptr.vmem [resolvable:$true] %s63_s16 }
   0x8   :  { %s1337_s19 = scalar_lea.hbm %s1930_s1, 128 }
   0x9   :  { %p1338_p0 = scmp.ne.s32.totalorder %s1930_s1, %s1337_s19  ;;  %p1341_p1 = scmp.lt.u32.totalorder %s1337_s19, %s1930_s1 }
   0xb   :  { %p1343_p2 = pnand %p1341_p1, %p1338_p0 }
   0xd   :  { %1346 = shalt.err (!%p1343_p2)
}
   0xe   :  { %s1347_s24 = scalar_lea.vmem %s40_s14, 128  ;;  %p1352_p4 = scmp.lt.s32.totalorder %s40_s14, %s40_s14 }
   0xf   :  { %p1348_p3 = scmp.ne.s32.totalorder %s40_s14, %s1347_s24  ;;  %p1353_p5 = scmp.lt.s32.totalorder %s1347_s24, %s1347_s24 }
  0x11   :  { %p1354_p6 = por %p1353_p5, %p1352_p4 }
  0x13   :  { %p1355_p7 = pnand %p1354_p6, %p1348_p3 }
  0x15   :  { %1358 = shalt.err (!%p1355_p7)
}
  0x16   :  { %s1595_s25 = smov 64   ;;  %s1596_s26 = smov 4  }
  0x17   :  { %45 = dma.hbm_to_vmem [thread:$0]  %s1930_s1, 128, %s40_s14, [#allocation6], %s1595_s25, %s1595_s25, %s1596_s26  }
  0x18   :  { %s1359_s11 = scalar_lea.hbm %s1932_s3, 1024 }
  0x19   :  { %p1360_p8 = scmp.ne.s32.totalorder %s1932_s3, %s1359_s11  ;;  %p1363_p9 = scmp.lt.u32.totalorder %s1359_s11, %s1932_s3 }
  0x1b   :  { %p1365_p10 = pnand %p1363_p9, %p1360_p8 }
  0x1d   :  { %1368 = shalt.err (!%p1365_p10)
}
  0x1e   :  { %s1369_s18 = scalar_lea.vmem %s1666_s16, 1024  ;;  %p1374_p12 = scmp.lt.s32.totalorder %s1666_s16, %s1666_s16 }
  0x1f   :  { %p1370_p11 = scmp.ne.s32.totalorder %s1666_s16, %s1369_s18  ;;  %p1375_p13 = scmp.lt.s32.totalorder %s1369_s18, %s1369_s18 }
  0x21   :  { %p1376_p0 = por %p1375_p13, %p1374_p12 }
  0x23   :  { %p1377_p1 = pnand %p1376_p0, %p1370_p11 }
  0x25   :  { %1380 = shalt.err (!%p1377_p1)
}
  0x26   :  { %69 = dma.hbm_to_vmem [thread:$0]  %s1932_s3, 1024, %s1666_s16, [#allocation9], %s1595_s25, %s1595_s25, %s1596_s26  }
  0x27   :  { %s1597_s19 = smov [#allocation11]   ;;  %s1381_s23 = scalar_lea.hbm %s1934_s5, 256 }
  0x28   :  { %s87_s20 = sshll.u32 %s1597_s19, 4  ;;  %p1382_p2 = scmp.ne.s32.totalorder %s1934_s5, %s1381_s23  ;;  %s88_s20 = int_to_ptr.vmem [resolvable:$true] %s87_s20 }
  0x29   :  { %p1385_p3 = scmp.lt.u32.totalorder %s1381_s23, %s1934_s5 }
  0x2b   :  { %p1387_p4 = pnand %p1385_p3, %p1382_p2 }
  0x2d   :  { %1390 = shalt.err (!%p1387_p4)
}
  0x2e   :  { %s1391_s30 = scalar_lea.vmem %s88_s20, 256  ;;  %p1396_p6 = scmp.lt.s32.totalorder %s88_s20, %s88_s20 }
  0x2f   :  { %p1392_p5 = scmp.ne.s32.totalorder %s88_s20, %s1391_s30  ;;  %p1397_p7 = scmp.lt.s32.totalorder %s1391_s30, %s1391_s30 }
  0x31   :  { %p1398_p8 = por %p1397_p7, %p1396_p6 }
  0x33   :  { %p1399_p9 = pnand %p1398_p8, %p1392_p5 }
  0x35   :  { %1402 = shalt.err (!%p1399_p9)
}
  0x36   :  { %s1598_s3 = smov 128   ;;  %s1599_s16 = smov 8  }
  0x37   :  { %93 = dma.hbm_to_vmem [thread:$0]  %s1934_s5, 256, %s88_s20, [#allocation12], %s1598_s3, %s1598_s3, %s1599_s16  }
  0x38   :  { %s1600_s13 = smov [#allocation14]   ;;  %s1601_s17 = smov [#allocation2]  }
  0x39   :  { %s110_s15 = sshll.u32 %s1600_s13, 4  ;;  %s27_s18 = sshll.u32 %s1601_s17, 4  ;;  %s111_s15 = int_to_ptr.vmem [resolvable:$true] %s110_s15  ;;  %s28_s18 = int_to_ptr.vmem [resolvable:$true] %s27_s18 }
  0x3a   :  { %s1403_s19 = scalar_lea.hbm %s1936_s7, 32 }
  0x3b   :  { %p1404_p10 = scmp.ne.s32.totalorder %s1936_s7, %s1403_s19  ;;  %p1407_p11 = scmp.lt.u32.totalorder %s1403_s19, %s1936_s7 }
  0x3d   :  { %p1409_p12 = pnand %p1407_p11, %p1404_p10 }
  0x3f   :  { %1412 = shalt.err (!%p1409_p12)
}
  0x40   :  { %s1413_s5 = scalar_lea.vmem %s111_s15, 32  ;;  %p1418_p0 = scmp.lt.s32.totalorder %s111_s15, %s111_s15 }
  0x41   :  { %p1414_p13 = scmp.ne.s32.totalorder %s111_s15, %s1413_s5  ;;  %p1419_p1 = scmp.lt.s32.totalorder %s1413_s5, %s1413_s5 }
  0x43   :  { %p1420_p2 = por %p1419_p1, %p1418_p0 }
  0x45   :  { %p1421_p3 = pnand %p1420_p2, %p1414_p13 }
  0x47   :  { %1424 = shalt.err (!%p1421_p3)
}
  0x48   :  { %113 = dma.hbm_to_vmem [thread:$0]  %s1936_s7, 32, %s111_s15, [#allocation15]  }
  0x49   :  { %s1425_s30 = scalar_lea.hbm %s1929_s0, 128 }
  0x4a   :  { %p1426_p4 = scmp.ne.s32.totalorder %s1929_s0, %s1425_s30  ;;  %p1429_p5 = scmp.lt.u32.totalorder %s1425_s30, %s1929_s0 }
  0x4c   :  { %p1431_p6 = pnand %p1429_p5, %p1426_p4 }
  0x4e   :  { %1434 = shalt.err (!%p1431_p6)
}
  0x4f   :  { %s1435_s13 = scalar_lea.vmem %s28_s18, 128  ;;  %p1440_p8 = scmp.lt.s32.totalorder %s28_s18, %s28_s18 }
  0x50   :  { %p1436_p7 = scmp.ne.s32.totalorder %s28_s18, %s1435_s13  ;;  %p1441_p9 = scmp.lt.s32.totalorder %s1435_s13, %s1435_s13 }
  0x52   :  { %p1442_p10 = por %p1441_p9, %p1440_p8 }
  0x54   :  { %p1443_p11 = pnand %p1442_p10, %p1436_p7 }
  0x56   :  { %1446 = shalt.err (!%p1443_p11)
}
  0x57   :  { %33 = dma.hbm_to_vmem [thread:$0]  %s1929_s0, 128, %s28_s18, [#allocation3], %s1595_s25, %s1595_s25, %s1596_s26  }
  0x58   :  { %s1602_s17 = smov [#allocation7]   ;;  %s1603_s14 = smov [#allocation10]  }
  0x59   :  { %s51_s1 = sshll.u32 %s1602_s17, 4  ;;  %s75_s19 = sshll.u32 %s1603_s14, 4  ;;  %s52_s1 = int_to_ptr.vmem [resolvable:$true] %s51_s1  ;;  %s76_s19 = int_to_ptr.vmem [resolvable:$true] %s75_s19 }
  0x5a   :  { %s1447_s23 = scalar_lea.hbm %s1931_s2, 1024 }
  0x5b   :  { %p1448_p12 = scmp.ne.s32.totalorder %s1931_s2, %s1447_s23  ;;  %p1451_p13 = scmp.lt.u32.totalorder %s1447_s23, %s1931_s2 }
  0x5d   :  { %p1453_p0 = pnand %p1451_p13, %p1448_p12 }
  0x5f   :  { %1456 = shalt.err (!%p1453_p0)
}
  0x60   :  { %s1457_s0 = scalar_lea.vmem %s52_s1, 1024  ;;  %p1462_p2 = scmp.lt.s32.totalorder %s52_s1, %s52_s1 }
  0x61   :  { %p1458_p1 = scmp.ne.s32.totalorder %s52_s1, %s1457_s0  ;;  %p1463_p3 = scmp.lt.s32.totalorder %s1457_s0, %s1457_s0 }
  0x63   :  { %p1464_p4 = por %p1463_p3, %p1462_p2 }
  0x65   :  { %p1465_p5 = pnand %p1464_p4, %p1458_p1 }
  0x67   :  { %1468 = shalt.err (!%p1465_p5)
}
  0x68   :  { %57 = dma.hbm_to_vmem [thread:$0]  %s1931_s2, 1024, %s52_s1, [#allocation6], %s1595_s25, %s1595_s25, %s1596_s26  }
  0x69   :  { %s1469_s3 = scalar_lea.hbm %s1933_s4, 1024 }
  0x6a   :  { %p1470_p6 = scmp.ne.s32.totalorder %s1933_s4, %s1469_s3  ;;  %p1473_p7 = scmp.lt.u32.totalorder %s1469_s3, %s1933_s4 }
  0x6c   :  { %p1475_p8 = pnand %p1473_p7, %p1470_p6 }
  0x6e   :  { %1478 = shalt.err (!%p1475_p8)
}
  0x6f   :  { %s1479_s7 = scalar_lea.vmem %s76_s19, 1024  ;;  %p1484_p10 = scmp.lt.s32.totalorder %s76_s19, %s76_s19 }
  0x70   :  { %p1480_p9 = scmp.ne.s32.totalorder %s76_s19, %s1479_s7  ;;  %p1485_p11 = scmp.lt.s32.totalorder %s1479_s7, %s1479_s7 }
  0x72   :  { %p1486_p12 = por %p1485_p11, %p1484_p10 }
  0x74   :  { %p1487_p13 = pnand %p1486_p12, %p1480_p9 }
  0x76   :  { %1490 = shalt.err (!%p1487_p13)
}
  0x77   :  { %81 = dma.hbm_to_vmem [thread:$0]  %s1933_s4, 1024, %s76_s19, [#allocation9], %s1595_s25, %s1595_s25, %s1596_s26  }
  0x78   :  { %s1604_s17 = smov [#allocation13]   ;;  %s1605_s14 = smov [#allocation16]  }
  0x79   :  { %s100_s1 = sshll.u32 %s1604_s17, 4  ;;  %s119_s21 = sshll.u32 %s1605_s14, 4  ;;  %s101_s1 = int_to_ptr.vmem [resolvable:$true] %s100_s1  ;;  %s120_s21 = int_to_ptr.vmem [resolvable:$true] %s119_s21 }
  0x7a   :  { %s1491_s24 = scalar_lea.hbm %s1935_s6, 16 }
  0x7b   :  { %p1492_p0 = scmp.ne.s32.totalorder %s1935_s6, %s1491_s24  ;;  %p1495_p1 = scmp.lt.u32.totalorder %s1491_s24, %s1935_s6 }
  0x7d   :  { %p1497_p2 = pnand %p1495_p1, %p1492_p0 }
  0x7f   :  { %1500 = shalt.err (!%p1497_p2)
}
  0x80   :  { %s1501_s4 = scalar_lea.vmem %s101_s1, 16  ;;  %s1505_s19 = scalar_lea.vmem %s101_s1, 32 }
  0x81   :  { %p1502_p3 = scmp.ne.s32.totalorder %s101_s1, %s1501_s4  ;;  %p1506_p4 = scmp.lt.s32.totalorder %s101_s1, %s101_s1 }
  0x82   :  { %p1507_p5 = scmp.lt.s32.totalorder %s1505_s19, %s1501_s4 }
  0x84   :  { %p1508_p6 = por %p1507_p5, %p1506_p4 }
  0x86   :  { %p1509_p7 = pnand %p1508_p6, %p1502_p3 }
  0x88   :  { %1512 = shalt.err (!%p1509_p7)
}
  0x89   :  { %103 = dma.hbm_to_vmem [thread:$0]  %s1935_s6, 16, %s101_s1, [#allocation12]  }
  0x8a   :  { %s1513_s3 = scalar_lea.hbm %s1937_s8, 1024 }
  0x8b   :  { %p1514_p8 = scmp.ne.s32.totalorder %s1937_s8, %s1513_s3  ;;  %p1517_p9 = scmp.lt.u32.totalorder %s1513_s3, %s1937_s8 }
  0x8d   :  { %p1519_p10 = pnand %p1517_p9, %p1514_p8 }
  0x8f   :  { %1522 = shalt.err (!%p1519_p10)
}
  0x90   :  { %s1523_s7 = scalar_lea.vmem %s120_s21, 1024  ;;  %p1528_p12 = scmp.lt.s32.totalorder %s120_s21, %s120_s21 }
  0x91   :  { %p1524_p11 = scmp.ne.s32.totalorder %s120_s21, %s1523_s7  ;;  %p1529_p13 = scmp.lt.s32.totalorder %s1523_s7, %s1523_s7 }
  0x93   :  { %p1530_p0 = por %p1529_p13, %p1528_p12 }
  0x95   :  { %p1531_p1 = pnand %p1530_p0, %p1524_p11 }
  0x97   :  { %1534 = shalt.err (!%p1531_p1)
}
  0x98   :  { %125 = dma.hbm_to_vmem [thread:$0]  %s1937_s8, 1024, %s120_s21, [#allocation15], %s1595_s25, %s1595_s25, %s1596_s26  }
  0x99   :  { %s1606_s15 = smov [#allocation17]   ;;  %s1535_s22 = scalar_lea.hbm %s1938_s9, 1024 }
  0x9a   :  { %s131_s17 = sshll.u32 %s1606_s15, 4  ;;  %p1536_p2 = scmp.ne.s32.totalorder %s1938_s9, %s1535_s22  ;;  %s132_s17 = int_to_ptr.vmem [resolvable:$true] %s131_s17 }
  0x9b   :  { %p1539_p3 = scmp.lt.u32.totalorder %s1535_s22, %s1938_s9 }
  0x9d   :  { %p1541_p4 = pnand %p1539_p3, %p1536_p2 }
  0x9f   :  { %1544 = shalt.err (!%p1541_p4)
}
  0xa0   :  { %s1545_s27 = scalar_lea.vmem %s132_s17, 1024  ;;  %p1550_p6 = scmp.lt.s32.totalorder %s132_s17, %s132_s17 }
  0xa1   :  { %p1546_p5 = scmp.ne.s32.totalorder %s132_s17, %s1545_s27  ;;  %p1551_p7 = scmp.lt.s32.totalorder %s1545_s27, %s1545_s27 }
  0xa3   :  { %p1552_p8 = por %p1551_p7, %p1550_p6 }
  0xa5   :  { %p1553_p9 = pnand %p1552_p8, %p1546_p5 }
  0xa7   :  { %1556 = shalt.err (!%p1553_p9)
}
  0xa8   :  { %137 = dma.hbm_to_vmem [thread:$0]  %s1938_s9, 1024, %s132_s17, [#allocation18], %s1595_s25, %s1595_s25, %s1596_s26  }
  0xa9   :  { %1579 = dma.done.wait [#allocation3], 128  }
  0xaa   :  { %1580 = vsyncadd [#allocation3], 4294967168 }
  0xab   :  { %1581 = dma.done.wait [#allocation6], 1152  }
  0xac   :  { %1582 = vsyncadd [#allocation6], 4294966144 }
  0xad   :  { %1583 = dma.done.wait [#allocation9], 2048  }
  0xae   :  { %1584 = vsyncadd [#allocation9], 4294965248 }
  0xaf   :  { %1585 = dma.done.wait [#allocation12], 272  }
  0xb0   :  { %1586 = vsyncadd [#allocation12], 4294967024 }
  0xb1   :  { %1587 = dma.done.wait [#allocation15], 1056  }
  0xb2   :  { %1588 = vsyncadd [#allocation15], 4294966240 }
  0xb3   :  { %1589 = dma.done.wait [#allocation18], 1024  }
  0xb4   :  { %1590 = vsyncadd [#allocation18], 4294966272  ;;  %v1607_v0 = vmov 0.0   ;;  %vm1608_vm0 = vmmov 0   ;;  %v1285_v1 = vld [vmem:[#allocation7] sm:$0xff]   ;;  %v1286_v2 = vld [vmem:[#allocation7 + $0x8] sm:$0xff]   ;;  %v287_v16 = vlaneseq }
  0xb5   :  { %1142 = vmatprep.subr.bf16.mxu0 %v1607_v0  ;;  %1158 = vmatprep.mubr.msk.bf16.mxu0 %vm1608_vm0, %v1607_v0  ;;  %v1287_v3 = vld [vmem:[#allocation7 + $0x10] sm:$0xff]   ;;  %v1288_v4 = vld [vmem:[#allocation7 + $0x18] sm:$0xff]   ;;  %v1289_v5 = vld [vmem:[#allocation7 + $0x20] sm:$0xff]   ;;  %vm296_vm1 = vcmask 130048   ;;  %vm886_vm2 = vcmask 1041408   ;;  %s1610_s9 = smov [#allocation19]  }
  0xb6   :  { %1168 = vmatprep.subr.bf16.mxu1 %v1607_v0  ;;  %1184 = vmatprep.mubr.msk.bf16.mxu1 %vm1608_vm0, %v1607_v0  ;;  %v1290_v6 = vld [vmem:[#allocation7 + $0x28] sm:$0xff]   ;;  %v1291_v7 = vld [vmem:[#allocation7 + $0x30] sm:$0xff]   ;;  %v1292_v8 = vld [vmem:[#allocation7 + $0x38] sm:$0xff]   ;;  %v1837_v17 = vshrl.u32 %v287_v16, 7  ;;  %s1029_s25 = sshll.u32 %s1610_s9, 4  ;;  %s1030_s25 = int_to_ptr.vmem [resolvable:$true] %s1029_s25 }
  0xb7   :  { %1143 = vmatpush3.bf16.msra.mxu0 %v1285_v1  ;;  %v1293_v9 = vld [vmem:[#allocation5] sm:$0xff]   ;;  %v1830_v15 = vld [vmem:[#allocation2] sm:$0xff]   ;;  %v1840_v19 = vld [vmem:[#allocation11] sm:$0xff]  ;;  %s1557_s26 = scalar_lea.vmem %s1030_s25, 32  ;;  %p1562_p11 = scmp.lt.s32.totalorder %s1030_s25, %s1030_s25 }
  0xb8   :  { %1144 = vmatprep.subr.bf16.mxu0 %v1607_v0  ;;  %v289_v18 = vsub.s32 0, %v1837_v17  ;;  %v1295_v29 = vld [vmem:[#allocation8] sm:$0xff]   ;;  %v1296_v30 = vld [vmem:[#allocation8 + $0x8] sm:$0xff]   ;;  %v1297_v31 = vld [vmem:[#allocation8 + $0x10] sm:$0xff]   ;;  %v369_v51 = vsub.s32 3, %v1837_v17  ;;  %v375_v54 = vsub.s32 5, %v1837_v17  ;;  %p1558_p10 = scmp.ne.s32.totalorder %s1030_s25, %s1557_s26  ;;  %p1563_p12 = scmp.lt.s32.totalorder %s1557_s26, %s1557_s26 }
  0xb9   :  { %1169 = vmatpush3.bf16.msra.mxu1 %v1295_v29  ;;  %v1298_v32 = vld [vmem:[#allocation8 + $0x18] sm:$0xff]   ;;  %v1299_v33 = vld [vmem:[#allocation8 + $0x20] sm:$0xff]   ;;  %v1300_v34 = vld [vmem:[#allocation8 + $0x28] sm:$0xff]  }
  0xba   :  { %v290_v20 = vrot.slane %v1840_v19, %v289_v18  ;;  %1170 = vmatprep.subr.bf16.mxu1 %v1607_v0  ;;  %v1301_v35 = vld [vmem:[#allocation8 + $0x30] sm:$0xff]   ;;  %v1302_v36 = vld [vmem:[#allocation8 + $0x38] sm:$0xff]   ;;  %v370_v53 = vrot.slane %v1840_v19, %v369_v51  ;;  %v376_v59 = vrot.slane %v1840_v19, %v375_v54  ;;  %v1308_v29 = vld [vmem:[#allocation10 + $0x28] sm:$0xff]   ;;  %p1564_p13 = por %p1563_p12, %p1562_p11 }
  0xbb   :  { %1145 = vmatpush3.bf16.msra.mxu0 %v1286_v2 }
  0xbc   :  { %1146 = vmatprep.subr.bf16.mxu0 %v1607_v0  ;;  %p1565_p0 = pnand %p1564_p13, %p1558_p10 }
  0xbd   :  { %1171 = vmatpush3.bf16.msra.mxu1 %v1296_v30  ;;  %v1309_v30 = vld [vmem:[#allocation10 + $0x30] sm:$0xff]  }
  0xbe   :  { %1172 = vmatprep.subr.bf16.mxu1 %v1607_v0 }
  0xbf   :  { %1147 = vmatpush3.bf16.msra.mxu0 %v1287_v3 }
  0xc0   :  { %1148 = vmatprep.subr.bf16.mxu0 %v1607_v0 }
  0xc1   :  { %1173 = vmatpush3.bf16.msra.mxu1 %v1297_v31  ;;  %v1310_v31 = vld [vmem:[#allocation10 + $0x38] sm:$0xff]  }
  0xc2   :  { %1174 = vmatprep.subr.bf16.mxu1 %v1607_v0 }
  0xc3   :  { %1149 = vmatpush3.bf16.msra.mxu0 %v1288_v4 }
  0xc4   :  { %1150 = vmatprep.subr.bf16.mxu0 %v1607_v0 }
  0xc5   :  { %1175 = vmatpush3.bf16.msra.mxu1 %v1298_v32 }
  0xc6   :  { %1176 = vmatprep.subr.bf16.mxu1 %v1607_v0 }
  0xc7   :  { %1151 = vmatpush3.bf16.msra.mxu0 %v1289_v5 }
  0xc8   :  { %1152 = vmatprep.subr.bf16.mxu0 %v1607_v0 }
  0xc9   :  { %1177 = vmatpush3.bf16.msra.mxu1 %v1299_v33 }
  0xca   :  { %1178 = vmatprep.subr.bf16.mxu1 %v1607_v0 }
  0xcb   :  { %1153 = vmatpush3.bf16.msra.mxu0 %v1290_v6 }
  0xcc   :  { %1154 = vmatprep.subr.bf16.mxu0 %v1607_v0 }
  0xcd   :  { %1179 = vmatpush3.bf16.msra.mxu1 %v1300_v34 }
  0xce   :  { %1180 = vmatprep.subr.bf16.mxu1 %v1607_v0 }
  0xcf   :  { %1155 = vmatpush3.bf16.msra.mxu0 %v1291_v7 }
  0xd0   :  { %1156 = vmatprep.subr.bf16.mxu0 %v1607_v0 }
  0xd1   :  { %1181 = vmatpush3.bf16.msra.mxu1 %v1301_v35 }
  0xd2   :  { %1182 = vmatprep.subr.bf16.mxu1 %v1607_v0 }
  0xd3   :  { %1157 = vmatpush3.bf16.msra.mxu0 %v1292_v8 }
  0xd4   :  { %1162 = vmatprep.subr.bf16.mxu0 %v1607_v0 }
  0xd5   :  { %1183 = vmatpush3.bf16.msra.mxu1 %v1302_v36 }
  0xd6   :  { %1159 = vmatmul.mubr.bf16.vlgmr.msra.gmra.mrb[0].mxu0 %v1293_v9  ;;  %1194 = vmatprep.subr.bf16.mxu1 %v1607_v0 }
  0xd7   :  { %1164 = vmatprep.mubr.msk.bf16.mxu0 %vm1608_vm0, %v1607_v0 }
 0x1a9   :  { %v279_v10 = vpop.f32.mrb[0].mxu0 }
 0x1aa   :  { %v1160_v11 = vpop.f32.mrb[1].mxu0 }
 0x1ab   :  { %v282_v12 = vpop.f32.mrb[2].mxu0 }
 0x1ac   :  { %v286_v13 = vpack.c.bf16 %v282_v12, %v279_v10  ;;  %v1161_v14 = vpop.f32.mrb[3].mxu0  ;;  %v490_v10 = vsub.s32 1, %v1837_v17 }
 0x1ae   :  { %1163 = vmatpush3.bf16.msra.mxu0 %v286_v13  ;;  %v491_v11 = vrot.slane %v1840_v19, %v490_v10 }
 0x1af   :  { %1188 = vmatprep.subr.bf16.mxu0 %v1607_v0 }
 0x1b1   :  { %1165 = vmatmul.mubr.msk.bf16.vlgmr.msra.gmra.mrb[4].mxu0 %vm296_vm1, %v1830_v15 }
 0x1b2   :  { %1190 = vmatprep.mubr.msk.bf16.mxu0 %vm1608_vm0, %v1607_v0 }
 0x284   :  { %v334_v21 = vpop.f32.mrb[4].mxu0 }
 0x285   :  { %v335_v22 = vadd.f32 %v334_v21, %v290_v20  ;;  %v1166_v23 = vpop.f32.mrb[5].mxu0 }
 0x286   :  { %v337_v24 = vpop.f32.mrb[6].mxu0 }
 0x287   :  { %v338_v25 = vadd.f32 %v337_v24, %v290_v20  ;;  %341 = vadd.xlane.f32.xlu0 %v335_v22  ;;  %v1167_v26 = vpop.f32.mrb[7].mxu0  ;;  %v347_v27 = vmul.f32 %v335_v22, %v335_v22  ;;  %v1303_v24 = vld [vmem:[#allocation10] sm:$0xff]  }
 0x288   :  { %v1305_v26 = vld [vmem:[#allocation10 + $0x10] sm:$0xff]  }
 0x289   :  { %349 = vadd.xlane.f32.xlu1 %v347_v27  ;;  %v348_v28 = vmul.f32 %v338_v25, %v338_v25  ;;  %v1306_v27 = vld [vmem:[#allocation10 + $0x18] sm:$0xff]  }
 0x28b   :  { %343 = vadd.xlane.f32.xlu0 %v338_v25 }
 0x28d   :  { %351 = vadd.xlane.f32.xlu1 %v348_v28  ;;  %v1307_v28 = vld [vmem:[#allocation10 + $0x20] sm:$0xff]  }
 0x314   :  { %v342_v37 = vpop.xlane.xlu0 %341 }
 0x315   :  { %v345_v38 = vmul.f32 0.03125, %v342_v37 }
 0x316   :  { %v350_v39 = vpop.xlane.xlu1 %349 }
 0x317   :  { %v355_v40 = vmul.f32 %v345_v38, %v345_v38  ;;  %v353_v41 = vmul.f32 0.03125, %v350_v39  ;;  %v359_v52 = vsub.f32 %v335_v22, %v345_v38 }
 0x318   :  { %v344_v42 = vpop.xlane.xlu0 %343 }
 0x319   :  { %v357_v43 = vsub.f32 %v353_v41, %v355_v40  ;;  %v346_v44 = vmul.f32 0.03125, %v344_v42 }
 0x31a   :  { %v352_v45 = vpop.xlane.xlu1 %351 }
 0x31b   :  { %v361_v46 = vadd.f32 1e-05, %v357_v43  ;;  %v356_v47 = vmul.f32 %v346_v44, %v346_v44  ;;  %v354_v48 = vmul.f32 0.03125, %v352_v45  ;;  %v360_v57 = vsub.f32 %v338_v25, %v346_v44  ;;  %v1304_v25 = vld [vmem:[#allocation10 + $0x8] sm:$0xff]  }
 0x31d   :  { %1327 = vrsqrt.f32 %v361_v46  ;;  %v358_v49 = vsub.f32 %v354_v48, %v356_v47  ;;  %v561_v46 = vsub.s32 4, %v1837_v17  ;;  %v567_v47 = vsub.s32 6, %v1837_v17 }
 0x31f   :  { %v362_v50 = vadd.f32 1e-05, %v358_v49  ;;  %v562_v49 = vrot.slane %v1840_v19, %v561_v46  ;;  %v1319_v46 = vld [vmem:[#allocation17] sm:$0xff]  }
 0x321   :  { %1329 = vrsqrt.f32 %v362_v50 }
 0x327   :  { %v1328_v55 = vpop.eup %1327 }
 0x328   :  { %v365_v56 = vmul.f32 %v1328_v55, %v359_v52 }
 0x32a   :  { %v371_v58 = vmul.f32 %v370_v53, %v365_v56 }
 0x32b   :  { %v1330_v60 = vpop.eup %1329 }
 0x32c   :  { %v366_v61 = vmul.f32 %v1330_v60, %v360_v57  ;;  %v377_v63 = vadd.f32 %v376_v59, %v371_v58 }
 0x32e   :  { %v372_v62 = vmul.f32 %v370_v53, %v366_v61  ;;  %v379_v2 = vmax.f32 %v377_v63, 0.0  ;;  %v568_v53 = vrot.slane %v1840_v19, %v567_v47  ;;  %v1320_v47 = vld [vmem:[#allocation17 + $0x8] sm:$0xff]  }
 0x330   :  { %v378_v1 = vadd.f32 %v376_v59, %v372_v62 }
 0x332   :  { %v380_v3 = vmax.f32 %v378_v1, 0.0 }
 0x334   :  { %v381_v4 = vpack.c.bf16 %v380_v3, %v379_v2 }
 0x336   :  { %1185 = vmatmul.mubr.bf16.vlgmr.msra.gmra.mrb[0].mxu1 %v381_v4 }
 0x337   :  { %1210 = vmatprep.mubr.msk.bf16.mxu1 %vm1608_vm0, %v1607_v0  ;;  %1195 = vmatpush3.bf16.msra.mxu1 %v1303_v24  ;;  %v1314_v24 = vld [vmem:[#allocation16 + $0x18] sm:$0xff]  }
 0x338   :  { %1196 = vmatprep.subr.bf16.mxu1 %v1607_v0 }
 0x33b   :  { %1197 = vmatpush3.bf16.msra.mxu1 %v1304_v25  ;;  %v1315_v25 = vld [vmem:[#allocation16 + $0x20] sm:$0xff]  }
 0x33c   :  { %1198 = vmatprep.subr.bf16.mxu1 %v1607_v0 }
 0x33f   :  { %1199 = vmatpush3.bf16.msra.mxu1 %v1305_v26  ;;  %v1316_v26 = vld [vmem:[#allocation16 + $0x28] sm:$0xff]  }
 0x340   :  { %1200 = vmatprep.subr.bf16.mxu1 %v1607_v0 }
 0x343   :  { %1201 = vmatpush3.bf16.msra.mxu1 %v1306_v27  ;;  %v1317_v27 = vld [vmem:[#allocation16 + $0x30] sm:$0xff]  }
 0x344   :  { %1202 = vmatprep.subr.bf16.mxu1 %v1607_v0 }
 0x347   :  { %1203 = vmatpush3.bf16.msra.mxu1 %v1307_v28  ;;  %v1318_v28 = vld [vmem:[#allocation16 + $0x38] sm:$0xff]  }
 0x348   :  { %1204 = vmatprep.subr.bf16.mxu1 %v1607_v0 }
 0x34b   :  { %1205 = vmatpush3.bf16.msra.mxu1 %v1308_v29 }
 0x34c   :  { %1206 = vmatprep.subr.bf16.mxu1 %v1607_v0 }
 0x34f   :  { %1207 = vmatpush3.bf16.msra.mxu1 %v1309_v30 }
 0x350   :  { %1208 = vmatprep.subr.bf16.mxu1 %v1607_v0 }
 0x353   :  { %1209 = vmatpush3.bf16.msra.mxu1 %v1310_v31 }
 0x354   :  { %1246 = vmatprep.subr.bf16.mxu1 %v1607_v0 }
 0x409   :  { %v480_v5 = vpop.f32.mrb[0].mxu1 }
 0x40a   :  { %v1186_v6 = vpop.f32.mrb[1].mxu1 }
 0x40b   :  { %v483_v7 = vpop.f32.mrb[2].mxu1  ;;  %v1609_v6 = vmov 0  }
 0x40c   :  { %v487_v8 = vpack.c.bf16 %v483_v7, %v480_v5  ;;  %v1187_v9 = vpop.f32.mrb[3].mxu1  ;;  %v770_v5 = vld [vmem:[#allocation14] sm:$0x3]  ;;  %1284 = vset.pattern.permute.xlu0 %v1609_v6  ;;  %v682_v7 = vsub.s32 2, %v1837_v17 }
 0x40e   :  { %1189 = vmatpush3.bf16.msra.mxu0 %v487_v8  ;;  %v683_v8 = vrot.slane %v1840_v19, %v682_v7 }
 0x40f   :  { %1214 = vmatprep.subr.bf16.mxu0 %v1607_v0 }
 0x411   :  { %1191 = vmatmul.mubr.msk.bf16.vlgmr.msra.gmra.mrb[8].mxu0 %vm296_vm1, %v1830_v15 }
 0x412   :  { %1216 = vmatprep.mubr.msk.bf16.mxu0 %vm1608_vm0, %v1607_v0 }
 0x4e4   :  { %v526_v12 = vpop.f32.mrb[8].mxu0 }
 0x4e5   :  { %v527_v13 = vadd.f32 %v526_v12, %v491_v11  ;;  %v1192_v14 = vpop.f32.mrb[9].mxu0 }
 0x4e6   :  { %v529_v16 = vpop.f32.mrb[10].mxu0 }
 0x4e7   :  { %v530_v20 = vadd.f32 %v529_v16, %v491_v11  ;;  %533 = vadd.xlane.f32.xlu0 %v527_v13  ;;  %v1193_v21 = vpop.f32.mrb[11].mxu0  ;;  %v539_v22 = vmul.f32 %v527_v13, %v527_v13 }
 0x4e8   :  { %v1311_v21 = vld [vmem:[#allocation16] sm:$0xff]  }
 0x4e9   :  { %535 = vadd.xlane.f32.xlu1 %v530_v20  ;;  %v540_v23 = vmul.f32 %v530_v20, %v530_v20 }
 0x4eb   :  { %541 = vadd.xlane.f32.xlu0 %v539_v22  ;;  %v1312_v22 = vld [vmem:[#allocation16 + $0x8] sm:$0xff]  }
 0x4ed   :  { %543 = vadd.xlane.f32.xlu1 %v540_v23  ;;  %v1313_v23 = vld [vmem:[#allocation16 + $0x10] sm:$0xff]  }
 0x501   :  { %773 = vperm.xlu0 %1284, %v770_v5  }
 0x574   :  { %v534_v32 = vpop.xlane.xlu0 %533 }
 0x575   :  { %v537_v33 = vmul.f32 0.03125, %v534_v32 }
 0x576   :  { %v536_v34 = vpop.xlane.xlu1 %535 }
 0x577   :  { %v538_v35 = vmul.f32 0.03125, %v536_v34  ;;  %v547_v37 = vmul.f32 %v537_v33, %v537_v33  ;;  %v551_v48 = vsub.f32 %v527_v13, %v537_v33 }
 0x578   :  { %v542_v36 = vpop.xlane.xlu0 %541 }
 0x579   :  { %v545_v38 = vmul.f32 0.03125, %v542_v36  ;;  %v548_v40 = vmul.f32 %v538_v35, %v538_v35  ;;  %v552_v51 = vsub.f32 %v530_v20, %v538_v35  ;;  %v725_v20 = vld [vmem:[#allocation13] sm:$0x1]  ;;  %v796_v36 = vsub.s32 7, %v1837_v17 }
 0x57a   :  { %v544_v39 = vpop.xlane.xlu1 %543 }
 0x57b   :  { %v549_v41 = vsub.f32 %v545_v38, %v547_v37  ;;  %v546_v42 = vmul.f32 0.03125, %v544_v39  ;;  %v797_v37 = vrot.slane %v1840_v19, %v796_v36  ;;  %v1321_v19 = vld [vmem:[#allocation17 + $0x10] sm:$0xff]  }
 0x57d   :  { %v553_v43 = vadd.f32 1e-05, %v549_v41  ;;  %v550_v44 = vsub.f32 %v546_v42, %v548_v40 }
 0x57f   :  { %1331 = vrsqrt.f32 %v553_v43  ;;  %v554_v45 = vadd.f32 1e-05, %v550_v44 }
 0x580   :  { %v774_v29 = vpop.permute.xlu0 %773 }
 0x581   :  { %1333 = vrsqrt.f32 %v554_v45 }
 0x589   :  { %v1332_v50 = vpop.eup %1331 }
 0x58a   :  { %v557_v52 = vmul.f32 %v1332_v50, %v551_v48  ;;  %v1322_v48 = vld [vmem:[#allocation17 + $0x18] sm:$0xff]   ;;  %v1324_v50 = vld [vmem:[#allocation17 + $0x28] sm:$0xff]  }
 0x58b   :  { %v1334_v54 = vpop.eup %1333 }
 0x58c   :  { %v558_v55 = vmul.f32 %v1334_v54, %v552_v51  ;;  %v563_v56 = vmul.f32 %v562_v49, %v557_v52  ;;  %v1325_v51 = vld [vmem:[#allocation17 + $0x30] sm:$0xff]   ;;  %v1326_v52 = vld [vmem:[#allocation17 + $0x38] sm:$0xff]  }
 0x58e   :  { %v564_v57 = vmul.f32 %v562_v49, %v558_v55  ;;  %v569_v58 = vadd.f32 %v568_v53, %v563_v56  ;;  %v1323_v49 = vld [vmem:[#allocation17 + $0x20] sm:$0xff]  }
 0x590   :  { %v570_v59 = vadd.f32 %v568_v53, %v564_v57  ;;  %v571_v60 = vmax.f32 %v569_v58, 0.0 }
 0x592   :  { %v572_v61 = vmax.f32 %v570_v59, 0.0 }
 0x594   :  { %v573_v62 = vpack.c.bf16 %v572_v61, %v571_v60  ;;  %v172_v60 = vld [vmem:[#allocation11 + $0x8] sm:$0x7] }
 0x595   :  { %v905_v61 = vrot.slane %v172_v60, %v289_v18  ;;  %v933_v6 = vrot.slane %v172_v60, %v682_v7 }
 0x596   :  { %1211 = vmatmul.mubr.bf16.vlgmr.msra.gmra.mrb[4].mxu1 %v573_v62 }
 0x597   :  { %1262 = vmatprep.mubr.msk.bf16.mxu1 %vm1608_vm0, %v1607_v0  ;;  %1247 = vmatpush3.bf16.msra.mxu1 %v1319_v46 }
 0x598   :  { %1248 = vmatprep.subr.bf16.mxu1 %v1607_v0 }
 0x59b   :  { %1249 = vmatpush3.bf16.msra.mxu1 %v1320_v47 }
 0x59c   :  { %1250 = vmatprep.subr.bf16.mxu1 %v1607_v0 }
 0x59f   :  { %1251 = vmatpush3.bf16.msra.mxu1 %v1321_v19 }
 0x5a0   :  { %1252 = vmatprep.subr.bf16.mxu1 %v1607_v0 }
 0x5a3   :  { %1253 = vmatpush3.bf16.msra.mxu1 %v1322_v48 }
 0x5a4   :  { %1254 = vmatprep.subr.bf16.mxu1 %v1607_v0 }
 0x5a7   :  { %1255 = vmatpush3.bf16.msra.mxu1 %v1323_v49 }
 0x5a8   :  { %1256 = vmatprep.subr.bf16.mxu1 %v1607_v0 }
 0x5ab   :  { %1257 = vmatpush3.bf16.msra.mxu1 %v1324_v50 }
 0x5ac   :  { %1258 = vmatprep.subr.bf16.mxu1 %v1607_v0 }
 0x5af   :  { %1259 = vmatpush3.bf16.msra.mxu1 %v1325_v51 }
 0x5b0   :  { %1260 = vmatprep.subr.bf16.mxu1 %v1607_v0 }
 0x5b3   :  { %1261 = vmatpush3.bf16.msra.mxu1 %v1326_v52 }
 0x669   :  { %v672_v63 = vpop.f32.mrb[4].mxu1 }
 0x66a   :  { %v1212_v1 = vpop.f32.mrb[5].mxu1 }
 0x66b   :  { %v675_v2 = vpop.f32.mrb[6].mxu1  ;;  %v910_v1 = vrot.slane %v172_v60, %v490_v10 }
 0x66c   :  { %v679_v3 = vpack.c.bf16 %v675_v2, %v672_v63  ;;  %v1213_v4 = vpop.f32.mrb[7].mxu1 }
 0x66e   :  { %1215 = vmatpush3.bf16.msra.mxu0 %v679_v3 }
 0x66f   :  { %1220 = vmatprep.subr.bf16.mxu0 %v1607_v0 }
 0x671   :  { %1217 = vmatmul.mubr.msk.bf16.vlgmr.msra.gmra.mrb[12].mxu0 %vm296_vm1, %v1830_v15 }
 0x672   :  { %1222 = vmatprep.mubr.msk.bf16.mxu0 %vm1608_vm0, %v1607_v0 }
 0x744   :  { %v718_v9 = vpop.f32.mrb[12].mxu0 }
 0x745   :  { %v1218_v11 = vpop.f32.mrb[13].mxu0  ;;  %v719_v13 = vadd.f32 %v718_v9, %v683_v8 }
 0x746   :  { %v721_v12 = vpop.f32.mrb[14].mxu0 }
 0x747   :  { %v722_v14 = vadd.f32 %v721_v12, %v683_v8  ;;  %v1219_v16 = vpop.f32.mrb[15].mxu0 }
 0x749   :  { %v726_v15 = vpack.c.bf16 %v722_v14, %v719_v13 }
 0x74b   :  { %1221 = vmatpush3.bf16.msra.mxu0 %v726_v15 }
 0x74c   :  { %1226 = vmatprep.subr.bf16.mxu0 %v1607_v0 }
 0x74e   :  { %1223 = vmatmul.mubr.msk.bf16.vlgmr.msra.gmra.mrb[16].mxu0 %vm296_vm1, %v725_v20 }
 0x74f   :  { %1227 = vmatpush3.bf16.msra.mxu0 %v1311_v21  ;;  %1242 = vmatprep.mubr.msk.bf16.mxu0 %vm1608_vm0, %v1607_v0 }
 0x750   :  { %1228 = vmatprep.subr.bf16.mxu0 %v1607_v0 }
 0x753   :  { %1229 = vmatpush3.bf16.msra.mxu0 %v1312_v22 }
 0x754   :  { %1230 = vmatprep.subr.bf16.mxu0 %v1607_v0 }
 0x757   :  { %1231 = vmatpush3.bf16.msra.mxu0 %v1313_v23 }
 0x758   :  { %1232 = vmatprep.subr.bf16.mxu0 %v1607_v0 }
 0x75b   :  { %1233 = vmatpush3.bf16.msra.mxu0 %v1314_v24 }
 0x75c   :  { %1234 = vmatprep.subr.bf16.mxu0 %v1607_v0 }
 0x75f   :  { %1235 = vmatpush3.bf16.msra.mxu0 %v1315_v25 }
 0x760   :  { %1236 = vmatprep.subr.bf16.mxu0 %v1607_v0 }
 0x763   :  { %1237 = vmatpush3.bf16.msra.mxu0 %v1316_v26 }
 0x764   :  { %1238 = vmatprep.subr.bf16.mxu0 %v1607_v0 }
 0x767   :  { %1239 = vmatpush3.bf16.msra.mxu0 %v1317_v27 }
 0x768   :  { %1240 = vmatprep.subr.bf16.mxu0 %v1607_v0 }
 0x76b   :  { %1241 = vmatpush3.bf16.msra.mxu0 %v1318_v28 }
 0x821   :  { %v764_v30 = vpop.f32.mrb[16].mxu0 }
 0x822   :  { %v776_v31 = vmul.f32 %v774_v29, %v764_v30  ;;  %v1224_v32 = vpop.f32.mrb[17].mxu0 }
 0x823   :  { %v767_v33 = vpop.f32.mrb[18].mxu0 }
 0x824   :  { %v777_v34 = vpack.c.bf16 %v776_v31, %v776_v31  ;;  %v1225_v35 = vpop.f32.mrb[19].mxu0 }
 0x826   :  { %1243 = vmatmul.mubr.bf16.vlgmr.msra.gmra.mrb[20].mxu0 %v777_v34 }
 0x8f9   :  { %v880_v38 = vpop.f32.mrb[20].mxu0 }
 0x8fa   :  { %v881_v39 = vadd.f32 %v880_v38, %v797_v37  ;;  %v1244_v40 = vpop.f32.mrb[21].mxu0 }
 0x8fb   :  { %v883_v41 = vpop.f32.mrb[22].mxu0 }
 0x8fc   :  { %v887_v42 = vsel %vm886_vm2, %v881_v39, 0.0  ;;  %v1245_v43 = vpop.f32.mrb[23].mxu0  ;;  %v891_v44 = vmul.f32 %v881_v39, %v881_v39 }
 0x8fd   :  { %888 = vadd.xlane.f32.xlu1 %v887_v42 }
 0x8fe   :  { %v892_v45 = vsel %vm886_vm2, %v891_v44, 0.0 }
 0x901   :  { %893 = vadd.xlane.f32.xlu1 %v892_v45 }
 0x98a   :  { %v889_v53 = vpop.xlane.xlu1 %888 }
 0x98b   :  { %v890_v54 = vmul.f32 0.03125, %v889_v53 }
 0x98d   :  { %v896_v56 = vmul.f32 %v890_v54, %v890_v54  ;;  %v898_v62 = vsub.f32 %v881_v39, %v890_v54 }
 0x98e   :  { %v894_v55 = vpop.xlane.xlu1 %893 }
 0x98f   :  { %v895_v57 = vmul.f32 0.03125, %v894_v55 }
 0x991   :  { %v897_v58 = vsub.f32 %v895_v57, %v896_v56 }
 0x993   :  { %v899_v59 = vadd.f32 1e-05, %v897_v58 }
 0x995   :  { %1335 = vrsqrt.f32 %v899_v59 }
 0x99f   :  { %v1336_v63 = vpop.eup %1335 }
 0x9a0   :  { %v901_v2 = vmul.f32 %v1336_v63, %v898_v62 }
 0x9a2   :  { %v906_v0 = vmul.f32 %v905_v61, %v901_v2 }
 0x9a4   :  { %v911_v3 = vadd.f32 %v910_v1, %v906_v0 }
 0x9a6   :  { %v912_v4 = vmax.f32 %v911_v3, 0.0 }
 0x9a8   :  { %v913_v5 = vpack.c.bf16 %v912_v4, %v912_v4 }
 0x9aa   :  { %1263 = vmatmul.mubr.bf16.vlgmr.msra.gmra.mrb[8].mxu1 %v913_v5 }
 0xa7d   :  { %v1016_v8 = vpop.f32.mrb[8].mxu1 }
 0xa7e   :  { %v1017_v9 = vadd.f32 %v1016_v8, %v933_v6  ;;  %v1264_v11 = vpop.f32.mrb[9].mxu1 }
 0xa7f   :  { %v1019_v18 = vpop.f32.mrb[10].mxu1 }
 0xa80   :  { %1022 = vst [vmem:[#allocation19] sm:$0x3] %v1017_v9  ;;  %v1265_v12 = vpop.f32.mrb[11].mxu1 }
 0xa81   :  { %1568 = shalt.err (!%p1565_p0)
}
 0xa82   :  { %s1569_s19 = scalar_lea.hbm %s1939_s10, 32 }
 0xa83   :  { %p1570_p1 = scmp.ne.s32.totalorder %s1939_s10, %s1569_s19  ;;  %p1573_p2 = scmp.lt.u32.totalorder %s1569_s19, %s1939_s10 }
 0xa85   :  { %p1575_p3 = pnand %p1573_p2, %p1570_p1 }
 0xa87   :  { %1578 = shalt.err (!%p1575_p3)
}
 0xa88   :  { %1032 = dma.vmem_to_hbm [thread:$0]  %s1030_s25, 32, %s1939_s10, [#allocation4]  }
 0xa89   :  { %1591 = dma.done.wait [#allocation4], 32  }
 0xa8a   :  { %1592 = vsyncadd [#allocation4], 4294967264 }
 0xa8b   :  { %1036 = vsyncpa [#allocation3], 1 }
 0xa8c   :  { %1037 = vsyncpa [#allocation6], 1 }
 0xa8d   :  { %1038 = vsyncpa [#allocation9], 1 }
 0xa8e   :  { %1039 = vsyncpa [#allocation12], 1 }
 0xa8f   :  { %1040 = vsyncpa [#allocation15], 1 }
 0xa90   :  { %1041 = vsyncpa [#allocation18], 1 }
 0xa91   :  { %1042 = vsyncpa [#allocation4], 1 }

</bundles_post_ra>
